<compile_context>
chip_gen: v5e
topology: v5e:2x2
jax: 0.10.0
libtpu: 0.0.40
codegen_flags: <defaults>
</compile_context>

<pallas_src>
import functools

import jax
import jax.numpy as jnp
from jax.experimental import pallas as pl
from jax.experimental.pallas import tpu as pltpu


def _softplus(x):
    # Numerically-stable softplus; identical to log1p(exp(x)) for x <= 20
    # (same threshold behaviour as torch.nn.functional.softplus).
    return jnp.where(x > 20.0, x, jnp.log1p(jnp.exp(jnp.minimum(x, 20.0))))


def _layer_kernel(x_ref, w_mu_ref, w_rho_ref, w_eps_ref,
                  b_mu_ref, b_rho_ref, b_eps_ref, o_ref, acc_ref,
                  *, compute_dtype):
    k = pl.program_id(1)

    @pl.when(k == 0)
    def _():
        acc_ref[...] = jnp.zeros_like(acc_ref)

    # Weight tile is stored [K, N]: contraction dim already on sublanes -> clean MXU
    # operand, no XLU transpose.  Sampling math stays in f32 on the VPU/EUP.
    w = w_mu_ref[...] + _softplus(w_rho_ref[...]) * w_eps_ref[...]
    acc_ref[...] += jnp.dot(x_ref[...].astype(compute_dtype),
                            w.astype(compute_dtype),
                            preferred_element_type=jnp.float32)

    @pl.when(k == pl.num_programs(1) - 1)
    def _():
        b = b_mu_ref[...] + _softplus(b_rho_ref[...]) * b_eps_ref[...]   # [1, tn]
        o_ref[...] = (acc_ref[...] + b).astype(o_ref.dtype)


def _round_up(x, m):
    return ((x + m - 1) // m) * m


def bayes_linear_forward(x, w_mu, w_rho, w_eps, b_mu, b_rho, b_eps,
                         *, tn_max=256, tk_max=512, compute_dtype=jnp.float32):
    """x: [B, in], w_*: [out, in], b_*: [out].  Returns [B, out] float32."""
    B, in_f = x.shape
    out_f = w_mu.shape[0]
    f32 = jnp.float32

    # Pad K (contraction) and N (output) to lane-dense multiples of 128; pick tiles that
    # evenly divide the padded extents.
    K_pad = _round_up(in_f, 128)
    tk = K_pad if K_pad <= tk_max else tk_max
    K_pad = _round_up(K_pad, tk)

    N_pad = _round_up(out_f, 128)
    tn = N_pad if N_pad <= tn_max else tn_max
    N_pad = _round_up(N_pad, tn)

    xp = jnp.zeros((B, K_pad), f32).at[:, :in_f].set(x.astype(f32))

    def pad_w(a):  # [out, in] -> [K_pad, N_pad] (transpose once here, not in the kernel)
        return jnp.zeros((K_pad, N_pad), f32).at[:in_f, :out_f].set(a.astype(f32).T)

    def pad_b(a):  # [out] -> [1, N_pad]
        return jnp.zeros((1, N_pad), f32).at[0, :out_f].set(a.astype(f32))

    # TODO(synk): generate w_eps / b_eps on-chip with pltpu.prng_seed +
    # pltpu.prng_random_bits to cut the weight-stream HBM traffic by ~1/3; kept host-side
    # here so the forward stays bit-comparable with the torch/JAX reference.
    w_mu_t, w_rho_t, w_eps_t = pad_w(w_mu), pad_w(w_rho), pad_w(w_eps)
    b_mu2, b_rho2, b_eps2 = pad_b(b_mu), pad_b(b_rho), pad_b(b_eps)

    grid = (N_pad // tn, K_pad // tk)

    cost = pl.CostEstimate(
        flops=2 * B * K_pad * N_pad + 3 * K_pad * N_pad,
        transcendentals=2 * K_pad * N_pad + 2 * N_pad,
        bytes_accessed=4 * (3 * K_pad * N_pad + B * K_pad + 3 * N_pad + B * N_pad),
    )

    kernel = functools.partial(_layer_kernel, compute_dtype=compute_dtype)

    out_padded = pl.pallas_call(
        kernel,
        out_shape=jax.ShapeDtypeStruct((B, N_pad), jnp.float32),
        grid_spec=pltpu.PrefetchScalarGridSpec(
            num_scalar_prefetch=0,
            grid=grid,
            in_specs=[
                pl.BlockSpec((B, tk), lambda j, k: (0, k)),    # x
                pl.BlockSpec((tk, tn), lambda j, k: (k, j)),   # w_mu  [K, N]
                pl.BlockSpec((tk, tn), lambda j, k: (k, j)),   # w_rho [K, N]
                pl.BlockSpec((tk, tn), lambda j, k: (k, j)),   # w_eps [K, N]
                pl.BlockSpec((1, tn), lambda j, k: (0, j)),    # b_mu
                pl.BlockSpec((1, tn), lambda j, k: (0, j)),    # b_rho
                pl.BlockSpec((1, tn), lambda j, k: (0, j)),    # b_eps
            ],
            out_specs=pl.BlockSpec((B, tn), lambda j, k: (0, j)),
            scratch_shapes=[pltpu.VMEM((B, tn), jnp.float32)],
        ),
        compiler_params=pltpu.CompilerParams(
            dimension_semantics=("parallel", "arbitrary")),
        cost_estimate=cost,
    )(xp, w_mu_t, w_rho_t, w_eps_t, b_mu2, b_rho2, b_eps2)

    return out_padded[:, :out_f]


def scale_mixture_init(key, shape, lamda=0.03, sigma1=0.1, sigma2=0.003):
    """Deterministic stand-in for ScaleMixtureGaussian.sample: per-element mixture of
    N(0, sigma1) with prob lamda and N(0, sigma2) with prob 1-lamda."""
    k1, k2 = jax.random.split(key)
    mask = jax.random.bernoulli(k1, p=lamda, shape=shape)
    normals = jax.random.normal(k2, shape, dtype=jnp.float32)
    sigma = jnp.where(mask, sigma1, sigma2)
    return normals * sigma


if __name__ == "__main__":
    def run_case(batch, in_f, out_f, key, **kw):
        k_x, k_wmu, k_wrho, k_bmu, k_brho, k_weps, k_beps = jax.random.split(key, 7)
        x = jax.random.normal(k_x, (batch, in_f), dtype=jnp.float32)

        # Parameters (module __init__): w_mu/w_rho [out, in], b_mu/b_rho [out].
        w_mu = scale_mixture_init(k_wmu, (out_f, in_f))
        w_rho = scale_mixture_init(k_wrho, (out_f, in_f))
        b_mu = scale_mixture_init(k_bmu, (out_f,))
        b_rho = scale_mixture_init(k_brho, (out_f,))

        # Per-forward epsilon draws (Normal(0,1).sample in the torch forward).
        w_eps = jax.random.normal(k_weps, (out_f, in_f), dtype=jnp.float32)
        b_eps = jax.random.normal(k_beps, (out_f,), dtype=jnp.float32)

        out = bayes_linear_forward(x, w_mu, w_rho, w_eps, b_mu, b_rho, b_eps, **kw)
        out = jax.block_until_ready(out)

        # Pure-JAX reference of the same forward.
        w_ref = w_mu + jnp.log1p(jnp.exp(w_rho)) * w_eps
        b_ref = b_mu + jnp.log1p(jnp.exp(b_rho)) * b_eps
        ref = x @ w_ref.T + b_ref
        assert out.shape == (batch, out_f)
        assert jnp.allclose(out, ref, atol=1e-4, rtol=1e-4), \
            float(jnp.max(jnp.abs(out - ref)))

    root = jax.random.PRNGKey(0)
    k0, k1 = jax.random.split(root)

    # Toy module shape (single tile after padding).
    run_case(8, 32, 16, k0)
    # Multi-tile shape: forces the N/K grid, accumulator path, and lane-dense padding.
    run_case(8, 300, 150, k1, tn_max=128, tk_max=128)

    print("KERNEL_OK")
</pallas_src>

<mosaic_0001>
module attributes {stable_mosaic.version = 11 : i64} {
  func.func @_layer_kernel(%arg0: i32, %arg1: i32, %arg2: memref<8x128xf32, #tpu.memory_space<vmem>>, %arg3: memref<128x128xf32, #tpu.memory_space<vmem>>, %arg4: memref<128x128xf32, #tpu.memory_space<vmem>>, %arg5: memref<128x128xf32, #tpu.memory_space<vmem>>, %arg6: memref<1x128xf32, #tpu.memory_space<vmem>>, %arg7: memref<1x128xf32, #tpu.memory_space<vmem>>, %arg8: memref<1x128xf32, #tpu.memory_space<vmem>>, %arg9: memref<8x128xf32, #tpu.memory_space<vmem>>, %arg10: memref<8x128xf32, #tpu.memory_space<vmem>>) attributes {dimension_semantics = [#tpu.dimension_semantics<parallel>, #tpu.dimension_semantics<arbitrary>], iteration_bounds = array<i64: 1, 1>, scalar_prefetch = 0 : i64, scratch_operands = 1 : i64, tpu.core_type = #tpu.core_type<tc>, window_params = [{transform_indices = @transform_0, window_bounds = array<i64: 8, 128>}, {transform_indices = @transform_1, window_bounds = array<i64: 128, 128>}, {transform_indices = @transform_2, window_bounds = array<i64: 128, 128>}, {transform_indices = @transform_3, window_bounds = array<i64: 128, 128>}, {transform_indices = @transform_4, window_bounds = array<i64: 1, 128>}, {transform_indices = @transform_5, window_bounds = array<i64: 1, 128>}, {transform_indices = @transform_6, window_bounds = array<i64: 1, 128>}, {transform_indices = @transform_7, window_bounds = array<i64: 8, 128>}]} {
    %c0_i32 = arith.constant 0 : i32
    %0 = arith.cmpi eq, %arg1, %c0_i32 : i32
    %1 = arith.extui %0 : i1 to i32
    %c0_i32_0 = arith.constant 0 : i32
    %2 = arith.cmpi ne, %1, %c0_i32_0 : i32
    scf.if %2 {
      %cst_16 = arith.constant 0.000000e+00 : f32
      %23 = vector.broadcast %cst_16 : f32 to vector<8x128xf32>
      %c0_17 = arith.constant 0 : index
      %c0_18 = arith.constant 0 : index
      %24 = vector.load %arg10[%c0_17, %c0_18] : memref<8x128xf32, #tpu.memory_space<vmem>>, vector<8x128xf32>
      tpu.vector_store %arg10[%c0_17, %c0_18], %23 {strides = array<i32>} : memref<8x128xf32, #tpu.memory_space<vmem>>, vector<8x128xf32>,
    } else {
    }
    %c0 = arith.constant 0 : index
    %c0_1 = arith.constant 0 : index
    %3 = vector.load %arg3[%c0, %c0_1] : memref<128x128xf32, #tpu.memory_space<vmem>>, vector<128x128xf32>
    %c0_2 = arith.constant 0 : index
    %c0_3 = arith.constant 0 : index
    %4 = vector.load %arg4[%c0_2, %c0_3] : memref<128x128xf32, #tpu.memory_space<vmem>>, vector<128x128xf32>
    %cst = arith.constant 2.000000e+01 : f32
    %5 = vector.broadcast %cst : f32 to vector<128x128xf32>
    %6 = arith.cmpf ogt, %4, %5 : vector<128x128xf32>
    %cst_4 = arith.constant 2.000000e+01 : f32
    %7 = vector.broadcast %cst_4 : f32 to vector<128x128xf32>
    %8 = arith.minimumf %4, %7 : vector<128x128xf32>
    %9 = math.exp %8 : vector<128x128xf32>
    %10 = math.log1p %9 : vector<128x128xf32>
    %11 = arith.select %6, %4, %10 : vector<128x128xi1>, vector<128x128xf32>
    %c0_5 = arith.constant 0 : index
    %c0_6 = arith.constant 0 : index
    %12 = vector.load %arg5[%c0_5, %c0_6] : memref<128x128xf32, #tpu.memory_space<vmem>>, vector<128x128xf32>
    %13 = arith.mulf %11, %12 : vector<128x128xf32>
    %14 = arith.addf %3, %13 : vector<128x128xf32>
    %c0_7 = arith.constant 0 : index
    %c0_8 = arith.constant 0 : index
    %15 = vector.load %arg10[%c0_7, %c0_8] : memref<8x128xf32, #tpu.memory_space<vmem>>, vector<8x128xf32>
    %c0_9 = arith.constant 0 : index
    %c0_10 = arith.constant 0 : index
    %16 = vector.load %arg2[%c0_9, %c0_10] : memref<8x128xf32, #tpu.memory_space<vmem>>, vector<8x128xf32>
    %cst_11 = arith.constant dense<0.000000e+00> : vector<8x128xf32>
    %17 = tpu.matmul %16, %14, %cst_11 {dimension_numbers = #tpu.dot_dimension_numbers<[1], [0], [0], [1], [0, 0, 1, 1], [], []>} : vector<8x128xf32>, vector<128x128xf32>, vector<8x128xf32> -> vector<8x128xf32>
    %18 = arith.addf %15, %17 : vector<8x128xf32>
    %c0_12 = arith.constant 0 : index
    %c0_13 = arith.constant 0 : index
    %19 = vector.load %arg10[%c0_12, %c0_13] : memref<8x128xf32, #tpu.memory_space<vmem>>, vector<8x128xf32>
    tpu.vector_store %arg10[%c0_12, %c0_13], %18 {strides = array<i32>} : memref<8x128xf32, #tpu.memory_space<vmem>>, vector<8x128xf32>,
    %c0_i32_14 = arith.constant 0 : i32
    %20 = arith.cmpi eq, %arg1, %c0_i32_14 : i32
    %21 = arith.extui %20 : i1 to i32
    %c0_i32_15 = arith.constant 0 : i32
    %22 = arith.cmpi ne, %21, %c0_i32_15 : i32
    scf.if %22 {
      %c0_16 = arith.constant 0 : index
      %c0_17 = arith.constant 0 : index
      %23 = vector.load %arg6[%c0_16, %c0_17] : memref<1x128xf32, #tpu.memory_space<vmem>>, vector<1x128xf32>
      %c0_18 = arith.constant 0 : index
      %c0_19 = arith.constant 0 : index
      %24 = vector.load %arg7[%c0_18, %c0_19] : memref<1x128xf32, #tpu.memory_space<vmem>>, vector<1x128xf32>
      %cst_20 = arith.constant 2.000000e+01 : f32
      %25 = vector.broadcast %cst_20 : f32 to vector<1x128xf32>
      %26 = arith.cmpf ogt, %24, %25 : vector<1x128xf32>
      %cst_21 = arith.constant 2.000000e+01 : f32
      %27 = vector.broadcast %cst_21 : f32 to vector<1x128xf32>
      %28 = arith.minimumf %24, %27 : vector<1x128xf32>
      %29 = math.exp %28 : vector<1x128xf32>
      %30 = math.log1p %29 : vector<1x128xf32>
      %31 = arith.select %26, %24, %30 : vector<1x128xi1>, vector<1x128xf32>
      %c0_22 = arith.constant 0 : index
      %c0_23 = arith.constant 0 : index
      %32 = vector.load %arg8[%c0_22, %c0_23] : memref<1x128xf32, #tpu.memory_space<vmem>>, vector<1x128xf32>
      %33 = arith.mulf %31, %32 : vector<1x128xf32>
      %34 = arith.addf %23, %33 : vector<1x128xf32>
      %c0_24 = arith.constant 0 : index
      %c0_25 = arith.constant 0 : index
      %35 = vector.load %arg10[%c0_24, %c0_25] : memref<8x128xf32, #tpu.memory_space<vmem>>, vector<8x128xf32>
      %36 = vector.broadcast %34 : vector<1x128xf32> to vector<8x128xf32>
      %37 = arith.addf %35, %36 : vector<8x128xf32>
      %c0_26 = arith.constant 0 : index
      %c0_27 = arith.constant 0 : index
      %38 = vector.load %arg9[%c0_26, %c0_27] : memref<8x128xf32, #tpu.memory_space<vmem>>, vector<8x128xf32>
      tpu.vector_store %arg9[%c0_26, %c0_27], %37 {strides = array<i32>} : memref<8x128xf32, #tpu.memory_space<vmem>>, vector<8x128xf32>,
    } else {
    }
    return
  }
  func.func @transform_0(%arg0: i32, %arg1: i32) -> (i32, i32) {
    %c0_i32 = arith.constant 0 : i32
    %c0_i32_0 = arith.constant 0 : i32
    return %c0_i32, %arg1 : i32, i32
  }
  func.func @transform_1(%arg0: i32, %arg1: i32) -> (i32, i32) {
    %c0_i32 = arith.constant 0 : i32
    return %arg1, %arg0 : i32, i32
  }
  func.func @transform_2(%arg0: i32, %arg1: i32) -> (i32, i32) {
    %c0_i32 = arith.constant 0 : i32
    return %arg1, %arg0 : i32, i32
  }
  func.func @transform_3(%arg0: i32, %arg1: i32) -> (i32, i32) {
    %c0_i32 = arith.constant 0 : i32
    return %arg1, %arg0 : i32, i32
  }
  func.func @transform_4(%arg0: i32, %arg1: i32) -> (i32, i32) {
    %c0_i32 = arith.constant 0 : i32
    %c0_i32_0 = arith.constant 0 : i32
    return %c0_i32, %arg0 : i32, i32
  }
  func.func @transform_5(%arg0: i32, %arg1: i32) -> (i32, i32) {
    %c0_i32 = arith.constant 0 : i32
    %c0_i32_0 = arith.constant 0 : i32
    return %c0_i32, %arg0 : i32, i32
  }
  func.func @transform_6(%arg0: i32, %arg1: i32) -> (i32, i32) {
    %c0_i32 = arith.constant 0 : i32
    %c0_i32_0 = arith.constant 0 : i32
    return %c0_i32, %arg0 : i32, i32
  }
  func.func @transform_7(%arg0: i32, %arg1: i32) -> (i32, i32) {
    %c0_i32 = arith.constant 0 : i32
    %c0_i32_0 = arith.constant 0 : i32
    return %c0_i32, %arg0 : i32, i32
  }
}

</mosaic_0001>

<bundles_post_ra>
// kernel: tpu_custom_call.1
= control target key start
LH: loop header
LB: loop body
LE: loop exit
PB: predicated region body
PF: predicated region fallthrough
CT: control target
= control target key end

     0   :  { %12 = vsyncpa [#allocation4], 0  ;;  %s950_s0 = inlined_call_operand.hbm [shape: f32[8,128], index: 0, kind: input, shape index: {}]   ;;  %s951_s1 = inlined_call_operand.hbm [shape: f32[128,128], index: 1, kind: input, shape index: {}]   ;;  %s952_s2 = inlined_call_operand.hbm [shape: f32[128,128], index: 2, kind: input, shape index: {}]   ;;  %s953_s3 = inlined_call_operand.hbm [shape: f32[128,128], index: 3, kind: input, shape index: {}]   ;;  %s954_s4 = inlined_call_operand.vmem [shape: f32[1,128], index: 4, kind: input, shape index: {}]   ;;  %s955_s5 = inlined_call_operand.vmem [shape: f32[1,128], index: 5, kind: input, shape index: {}]   ;;  %s956_s6 = inlined_call_operand.vmem [shape: f32[1,128], index: 6, kind: input, shape index: {}]   ;;  %s957_s7 = inlined_call_operand.hbm [shape: f32[8,128], index: 7, kind: output, shape index: {}]  }
   0x1   :  { %13 = vsyncpa [#allocation7], 0 }
   0x2   :  { %14 = vsyncpa [#allocation10], 0  ;;  %s31_s26 = sshll.u32 %s951_s1, 4  ;;  %s32_s26 = int_to_ptr.hbm [resolvable:$true] %s31_s26 }
   0x3   :  { %15 = vsyncpa [#allocation5], 0  ;;  %s671_s27 = smov [#allocation6]   ;;  %s21_s8 = sshll.u32 %s950_s0, 4  ;;  %s22_s8 = int_to_ptr.hbm [resolvable:$true] %s21_s8 }
   0x4   :  { %s33_s28 = sshll.u32 %s671_s27, 4  ;;  %s672_s9 = smov 128   ;;  %s34_s28 = int_to_ptr.vmem [resolvable:$true] %s33_s28 }
   0x5   :  { %s673_s10 = smov 8   ;;  %s674_s11 = smov [#allocation3]  }
   0x6   :  { %39 = dma.hbm_to_vmem [thread:$0]  %s32_s26, 2048, %s34_s28, [#allocation7], %s672_s9, %s672_s9, %s673_s10  }
   0x7   :  { %s23_s12 = sshll.u32 %s674_s11, 4  ;;  %s44_s15 = sshll.u32 %s952_s2, 4  ;;  %s24_s12 = int_to_ptr.vmem [resolvable:$true] %s23_s12  ;;  %s45_s15 = int_to_ptr.hbm [resolvable:$true] %s44_s15 }
   0x8   :  { %26 = dma.hbm_to_vmem [thread:$0]  %s22_s8, 128, %s24_s12, [#allocation4]  }
   0x9   :  { %s57_s17 = sshll.u32 %s953_s3, 4  ;;  %s675_s18 = smov [#allocation8]   ;;  %s58_s17 = int_to_ptr.hbm [resolvable:$true] %s57_s17 }
   0xa   :  { %s46_s19 = sshll.u32 %s675_s18, 4  ;;  %s676_s0 = smov [#allocation9]   ;;  %s47_s19 = int_to_ptr.vmem [resolvable:$true] %s46_s19 }
   0xb   :  { %52 = dma.hbm_to_vmem [thread:$0]  %s45_s15, 2048, %s47_s19, [#allocation7], %s672_s9, %s672_s9, %s673_s10  }
   0xc   :  { %s59_s20 = sshll.u32 %s676_s0, 4  ;;  %s60_s20 = int_to_ptr.vmem [resolvable:$true] %s59_s20 }
   0xd   :  { %65 = dma.hbm_to_vmem [thread:$0]  %s58_s17, 2048, %s60_s20, [#allocation10], %s672_s9, %s672_s9, %s673_s10  }
   0xe   :  { %663 = dma.done.wait [#allocation4], 128  }
   0xf   :  { %664 = vsyncadd [#allocation4], 4294967168 }
  0x10   :  { %665 = dma.done.wait [#allocation7], 4096  }
  0x11   :  { %666 = vsyncadd [#allocation7], 4294963200 }
  0x12   :  { %667 = dma.done.wait [#allocation10], 2048  }
  0x13   :  { %668 = vsyncadd [#allocation10], 4294965248  ;;  %v730_v0 = vld [vmem:[#allocation8 + $0x78] sm:$0xff]  ;;  %v733_v2 = vld [vmem:[#allocation8 + $0x70] sm:$0xff]  ;;  %s677_s24 = smov [#allocation11]   ;;  %s456_s28 = sshll.u32 %s957_s7, 4  ;;  %s457_s28 = int_to_ptr.hbm [resolvable:$true] %s456_s28 }
  0x14   :  { %v156_v1 = vmin.f32 %v730_v0, 20.0  ;;  %v155_v3 = vmin.f32 %v733_v2, 20.0  ;;  %v736_v4 = vld [vmem:[#allocation8 + $0x68] sm:$0xff]  ;;  %v739_v7 = vld [vmem:[#allocation8 + $0x60] sm:$0xff]  ;;  %v742_v11 = vld [vmem:[#allocation8 + $0x58] sm:$0xff]  ;;  %vm140_vm0 = vcmp.gt.f32.partialorder %v730_v0, 20.0 }
  0x15   :  { %v154_v6 = vmin.f32 %v736_v4, 20.0  ;;  %v153_v9 = vmin.f32 %v739_v7, 20.0  ;;  %v152_v13 = vmin.f32 %v742_v11, 20.0  ;;  %v745_v14 = vld [vmem:[#allocation8 + $0x50] sm:$0xff]  ;;  %v748_v16 = vld [vmem:[#allocation8 + $0x48] sm:$0xff]  ;;  %v751_v19 = vld [vmem:[#allocation8 + $0x40] sm:$0xff] }
  0x16   :  { %v187_v5 = vmul.f32 1.442695, %v156_v1  ;;  %v185_v8 = vmul.f32 1.442695, %v155_v3  ;;  %v151_v15 = vmin.f32 %v745_v14, 20.0  ;;  %v150_v18 = vmin.f32 %v748_v16, 20.0 }
  0x17   :  { %v183_v10 = vmul.f32 1.442695, %v154_v6  ;;  %v181_v12 = vmul.f32 1.442695, %v153_v9  ;;  %v179_v17 = vmul.f32 1.442695, %v152_v13 }
  0x18   :  { %475 = vpow2.f32 %v187_v5  ;;  %v177_v20 = vmul.f32 1.442695, %v151_v15  ;;  %v149_v21 = vmin.f32 %v751_v19, 20.0  ;;  %v754_v22 = vld [vmem:[#allocation8 + $0x38] sm:$0xff]  ;;  %v175_v23 = vmul.f32 1.442695, %v150_v18 }
  0x19   :  { %477 = vpow2.f32 %v185_v8  ;;  %v148_v26 = vmin.f32 %v754_v22, 20.0  ;;  %v757_v27 = vld [vmem:[#allocation8 + $0x30] sm:$0xff]  ;;  %vm139_vm1 = vcmp.gt.f32.partialorder %v733_v2, 20.0  ;;  %vm138_vm3 = vcmp.gt.f32.partialorder %v736_v4, 20.0  ;;  %s454_s25 = sshll.u32 %s677_s24, 4  ;;  %s455_s25 = int_to_ptr.vmem [resolvable:$true] %s454_s25 }
  0x1a   :  { %479 = vpow2.f32 %v183_v10  ;;  %v173_v25 = vmul.f32 1.442695, %v149_v21  ;;  %v147_v39 = vmin.f32 %v757_v27, 20.0  ;;  %vm137_vm5 = vcmp.gt.f32.partialorder %v739_v7, 20.0 }
  0x1b   :  { %481 = vpow2.f32 %v181_v12  ;;  %vm136_vm7 = vcmp.gt.f32.partialorder %v742_v11, 20.0  ;;  %vm135_vm10 = vcmp.gt.f32.partialorder %v745_v14, 20.0  ;;  %v364_v12 = vld [vmem:[#allocation9 + $0x78] sm:$0xff]  ;;  %vm134_vm11 = vcmp.gt.f32.partialorder %v748_v16, 20.0 }
  0x1c   :  { %483 = vpow2.f32 %v179_v17  ;;  %vm133_vm15 = vcmp.gt.f32.partialorder %v751_v19, 20.0 }
  0x1d   :  { %485 = vpow2.f32 %v177_v20  ;;  %v363_v20 = vld [vmem:[#allocation9 + $0x70] sm:$0xff] }
  0x1e   :  { %v476_v24 = vpop.eup %475  ;;  %487 = vpow2.f32 %v175_v23 }
  0x1f   :  { %v478_v28 = vpop.eup %477  ;;  %v324_v29 = vadd.f32 1.0, %v476_v24  ;;  %v327_v30 = vmul.f32 -0.5, %v476_v24  ;;  %v330_v31 = vand.u32 2147483647, %v476_v24  ;;  %489 = vpow2.f32 %v173_v25 }
  0x20   :  { %v480_v32 = vpop.eup %479  ;;  %v315_v33 = vadd.f32 1.0, %v478_v28  ;;  %v318_v34 = vmul.f32 -0.5, %v478_v28  ;;  %v321_v35 = vand.u32 2147483647, %v478_v28 }
  0x21   :  { %v482_v36 = vpop.eup %481  ;;  %491 = vlog2.f32 %v324_v29  ;;  %v328_v37 = vadd.f32 1.0, %v327_v30  ;;  %v306_v38 = vadd.f32 1.0, %v480_v32  ;;  %vm762_vm2 = vcmp.lt.f32.partialorder %v330_v31, 0.0004427343  ;;  %v362_v31 = vld [vmem:[#allocation9 + $0x68] sm:$0xff] }
  0x22   :  { %493 = vlog2.f32 %v315_v33  ;;  %v319_v41 = vadd.f32 1.0, %v318_v34  ;;  %v309_v42 = vmul.f32 -0.5, %v480_v32  ;;  %v484_v43 = vpop.eup %483  ;;  %vm767_vm4 = vcmp.lt.f32.partialorder %v321_v35, 0.0004427343  ;;  %v107_v35 = vld [vmem:[#allocation6 + $0x70] sm:$0xff] }
  0x23   :  { %495 = vlog2.f32 %v306_v38  ;;  %v312_v45 = vand.u32 2147483647, %v480_v32  ;;  %v297_v46 = vadd.f32 1.0, %v482_v36  ;;  %v771_v47 = vpop.eup %485  ;;  %v329_v48 = vmul.f32 %v476_v24, %v328_v37 }
  0x24   :  { %v310_v49 = vadd.f32 1.0, %v309_v42  ;;  %v300_v50 = vmul.f32 -0.5, %v482_v36  ;;  %v303_v51 = vand.u32 2147483647, %v482_v36  ;;  %v774_v52 = vpop.eup %487  ;;  %v320_v53 = vmul.f32 %v478_v28, %v319_v41  ;;  %v108_v28 = vld [vmem:[#allocation6 + $0x78] sm:$0xff]  ;;  %v106_v41 = vld [vmem:[#allocation6 + $0x68] sm:$0xff] }
  0x25   :  { %497 = vlog2.f32 %v297_v46  ;;  %v288_v54 = vadd.f32 1.0, %v484_v43  ;;  %v291_v55 = vmul.f32 -0.5, %v484_v43  ;;  %v776_v56 = vpop.eup %489  ;;  %vm778_vm6 = vcmp.lt.f32.partialorder %v312_v45, 0.0004427343 }
  0x26   :  { %v311_v57 = vmul.f32 %v480_v32, %v310_v49  ;;  %v301_v59 = vadd.f32 1.0, %v300_v50  ;;  %v294_v60 = vand.u32 2147483647, %v484_v43  ;;  %v279_v63 = vadd.f32 1.0, %v771_v47 }
  0x27   :  { %v492_v61 = vpop.eup %491  ;;  %499 = vlog2.f32 %v288_v54  ;;  %v292_v62 = vadd.f32 1.0, %v291_v55  ;;  %v282_v1 = vmul.f32 -0.5, %v771_v47  ;;  %vm785_vm8 = vcmp.lt.f32.partialorder %v303_v51, 0.0004427343  ;;  %v105_v51 = vld [vmem:[#allocation6 + $0x60] sm:$0xff]  ;;  %v360_v54 = vld [vmem:[#allocation9 + $0x58] sm:$0xff] }
  0x28   :  { %v494_v3 = vpop.eup %493  ;;  %v326_v5 = vmul.f32 0.6931472, %v492_v61  ;;  %v302_v6 = vmul.f32 %v482_v36, %v301_v59  ;;  %vm789_vm9 = vcmp.lt.f32.partialorder %v294_v60, 0.0004427343  ;;  %501 = vlog2.f32 %v279_v63  ;;  %v104_v61 = vld [vmem:[#allocation6 + $0x58] sm:$0xff] }
  0x29   :  { %v496_v10 = vpop.eup %495  ;;  %v317_v13 = vmul.f32 0.6931472, %v494_v3  ;;  %v283_v15 = vadd.f32 1.0, %v282_v1  ;;  %v285_v17 = vand.u32 2147483647, %v771_v47  ;;  %v293_v23 = vmul.f32 %v484_v43, %v292_v62  ;;  %v361_v43 = vld [vmem:[#allocation9 + $0x60] sm:$0xff] }
  0x2a   :  { %v332_v18 = vsel %vm762_vm2, %v329_v48, %v326_v5  ;;  %v308_v21 = vmul.f32 0.6931472, %v496_v10  ;;  %v270_v24 = vadd.f32 1.0, %v774_v52  ;;  %v273_v33 = vmul.f32 -0.5, %v774_v52  ;;  %v816_v48 = vld [vmem:[#allocation8 + $0x28] sm:$0xff] }
  0x2b   :  { %v498_v25 = vpop.eup %497  ;;  %v348_v29 = vsel %vm140_vm0, %v730_v0, %v332_v18  ;;  %v323_v30 = vsel %vm767_vm4, %v320_v53, %v317_v13  ;;  %v284_v32 = vmul.f32 %v771_v47, %v283_v15  ;;  %vm821_vm12 = vcmp.lt.f32.partialorder %v285_v17, 0.0004427343 }
  0x2c   :  { %v380_v34 = vmul.f32 %v364_v12, %v348_v29  ;;  %v347_v36 = vsel %vm139_vm1, %v733_v2, %v323_v30  ;;  %v314_v37 = vsel %vm778_vm6, %v311_v57, %v308_v21  ;;  %v299_v38 = vmul.f32 0.6931472, %v498_v25  ;;  %v103_v12 = vld [vmem:[#allocation6 + $0x50] sm:$0xff]  ;;  %v851_v25 = vld [vmem:[#allocation8 + $0x18] sm:$0xff]  ;;  %v102_v30 = vld [vmem:[#allocation6 + $0x48] sm:$0xff] }
  0x2d   :  { %v500_v0 = vpop.eup %499  ;;  %v379_v40 = vmul.f32 %v363_v20, %v347_v36  ;;  %v346_v42 = vsel %vm138_vm3, %v736_v4, %v314_v37  ;;  %503 = vlog2.f32 %v270_v24  ;;  %v274_v44 = vadd.f32 1.0, %v273_v33 }
  0x2e   :  { %v396_v45 = vadd.f32 %v380_v34, %v108_v28  ;;  %v378_v46 = vmul.f32 %v362_v31, %v346_v42  ;;  %v305_v2 = vsel %vm785_vm8, %v302_v6, %v299_v38  ;;  %v290_v47 = vmul.f32 0.6931472, %v500_v0  ;;  %v502_v49 = vpop.eup %501  ;;  %v867_v0 = vld [vmem:[#allocation8 + $0x8] sm:$0xff] }
  0x2f   :  { %v395_v50 = vadd.f32 %v379_v40, %v107_v35  ;;  %v345_v53 = vsel %vm137_vm5, %v739_v7, %v305_v2  ;;  %v276_v55 = vand.u32 2147483647, %v774_v52  ;;  %v281_v60 = vmul.f32 0.6931472, %v502_v49  ;;  %v359_v7 = vld [vmem:[#allocation9 + $0x50] sm:$0xff] }
  0x30   :  { %399 = vmatpush.msra.mxu0 %v396_v45  ;;  %v394_v57 = vadd.f32 %v378_v46, %v106_v41  ;;  %v377_v58 = vmul.f32 %v361_v43, %v345_v53  ;;  %v296_v59 = vsel %vm789_vm9, %v293_v23, %v290_v47  ;;  %v261_v63 = vadd.f32 1.0, %v776_v56  ;;  %v358_v23 = vld [vmem:[#allocation9 + $0x48] sm:$0xff]  ;;  %v861_v35 = vld [vmem:[#allocation8 + $0x10] sm:$0xff]  ;;  %v357_v43 = vld [vmem:[#allocation9 + $0x40] sm:$0xff] }
  0x31   :  { %v344_v62 = vsel %vm136_vm7, %v742_v11, %v296_v59  ;;  %v264_v1 = vmul.f32 -0.5, %v776_v56  ;;  %v146_v3 = vmin.f32 %v816_v48, 20.0  ;;  %v287_v8 = vsel %vm821_vm12, %v284_v32, %v281_v60 }
  0x32   :  { %400 = vmatpush.msra.mxu0 %v395_v50  ;;  %v393_v5 = vadd.f32 %v377_v58, %v105_v51  ;;  %v376_v6 = vmul.f32 %v360_v54, %v344_v62  ;;  %v275_v9 = vmul.f32 %v774_v52, %v274_v44  ;;  %v343_v11 = vsel %vm135_vm10, %v745_v14, %v287_v8  ;;  %v846_v52 = vld [vmem:[#allocation8 + $0x20] sm:$0xff] }
  0x33   :  { %v504_v10 = vpop.eup %503  ;;  %vm840_vm13 = vcmp.lt.f32.partialorder %v276_v55, 0.0004427343  ;;  %505 = vlog2.f32 %v261_v63  ;;  %v171_v15 = vmul.f32 1.442695, %v148_v26  ;;  %v375_v18 = vmul.f32 %v359_v7, %v343_v11  ;;  %v101_v50 = vld [vmem:[#allocation6 + $0x40] sm:$0xff] }
  0x34   :  { %401 = vmatpush.msra.mxu0 %v394_v57  ;;  %v392_v17 = vadd.f32 %v376_v6, %v104_v61  ;;  %v272_v20 = vmul.f32 0.6931472, %v504_v10  ;;  %v265_v21 = vadd.f32 1.0, %v264_v1  ;;  %v267_v24 = vand.u32 2147483647, %v776_v56 }
  0x35   :  { %507 = vpow2.f32 %v171_v15  ;;  %v169_v14 = vmul.f32 1.442695, %v147_v39  ;;  %v391_v28 = vadd.f32 %v375_v18, %v103_v12  ;;  %v167_v29 = vmul.f32 1.442695, %v146_v3 }
  0x36   :  { %402 = vmatpush.msra.mxu0 %v393_v5  ;;  %v278_v26 = vsel %vm840_vm13, %v275_v9, %v272_v20  ;;  %v145_v32 = vmin.f32 %v846_v52, 20.0  ;;  %v266_v39 = vmul.f32 %v776_v56, %v265_v21  ;;  %v144_v34 = vmin.f32 %v851_v25, 20.0  ;;  %v870_v56 = vld [vmem:[#allocation8] sm:$0xff] }
  0x37   :  { %v342_v31 = vsel %vm134_vm11, %v748_v16, %v278_v26  ;;  %509 = vpow2.f32 %v169_v14  ;;  %vm863_vm14 = vcmp.lt.f32.partialorder %v267_v24, 0.0004427343  ;;  %v143_v44 = vmin.f32 %v861_v35, 20.0  ;;  %v356_v24 = vld [vmem:[#allocation9 + $0x38] sm:$0xff] }
  0x38   :  { %403 = vmatpush.msra.mxu0 %v392_v17  ;;  %v374_v33 = vmul.f32 %v358_v23, %v342_v31  ;;  %511 = vpow2.f32 %v167_v29  ;;  %v165_v38 = vmul.f32 1.442695, %v145_v32  ;;  %v163_v41 = vmul.f32 1.442695, %v144_v34 }
  0x39   :  { %v506_v36 = vpop.eup %505  ;;  %v142_v47 = vmin.f32 %v867_v0, 20.0  ;;  %v141_v54 = vmin.f32 %v870_v56, 20.0  ;;  %vm132_vm0 = vcmp.gt.f32.partialorder %v754_v22, 20.0  ;;  %v161_v61 = vmul.f32 1.442695, %v143_v44 }
  0x3a   :  { %404 = vmatpush.msra.mxu0 %v391_v28  ;;  %v390_v16 = vadd.f32 %v374_v33, %v102_v30  ;;  %v263_v40 = vmul.f32 0.6931472, %v506_v36  ;;  %513 = vpow2.f32 %v165_v38  ;;  %vm131_vm1 = vcmp.gt.f32.partialorder %v757_v27, 20.0  ;;  %v100_v30 = vld [vmem:[#allocation6 + $0x38] sm:$0xff] }
  0x3b   :  { %v508_v42 = vpop.eup %507  ;;  %515 = vpow2.f32 %v163_v41  ;;  %v159_v63 = vmul.f32 1.442695, %v142_v47  ;;  %vm130_vm3 = vcmp.gt.f32.partialorder %v816_v48, 20.0  ;;  %v157_v5 = vmul.f32 1.442695, %v141_v54  ;;  %v355_v41 = vld [vmem:[#allocation9 + $0x30] sm:$0xff] }
  0x3c   :  { %405 = vmatpush.msra.mxu0 %v390_v16  ;;  %v269_v45 = vsel %vm863_vm14, %v266_v39, %v263_v40  ;;  %v252_v46 = vadd.f32 1.0, %v508_v42  ;;  %v255_v2 = vmul.f32 -0.5, %v508_v42  ;;  %v258_v53 = vand.u32 2147483647, %v508_v42 }
  0x3d   :  { %v510_v49 = vpop.eup %509  ;;  %v341_v51 = vsel %vm133_vm15, %v751_v19, %v269_v45  ;;  %vm129_vm4 = vcmp.gt.f32.partialorder %v846_v52, 20.0  ;;  %vm128_vm9 = vcmp.gt.f32.partialorder %v851_v25, 20.0  ;;  %vm127_vm11 = vcmp.gt.f32.partialorder %v861_v35, 20.0 }
  0x3e   :  { %v512_v4 = vpop.eup %511  ;;  %v373_v55 = vmul.f32 %v357_v43, %v341_v51  ;;  %517 = vlog2.f32 %v252_v46  ;;  %v256_v57 = vadd.f32 1.0, %v255_v2  ;;  %v243_v58 = vadd.f32 1.0, %v510_v49 }
  0x3f   :  { %v246_v59 = vmul.f32 -0.5, %v510_v49  ;;  %v234_v60 = vadd.f32 1.0, %v512_v4  ;;  %v237_v7 = vmul.f32 -0.5, %v512_v4  ;;  %vm880_vm2 = vcmp.lt.f32.partialorder %v258_v53, 0.0004427343  ;;  %v99_v53 = vld [vmem:[#allocation6 + $0x30] sm:$0xff] }
  0x40   :  { %v389_v62 = vadd.f32 %v373_v55, %v101_v50  ;;  %v514_v19 = vpop.eup %513  ;;  %519 = vlog2.f32 %v243_v58  ;;  %v249_v3 = vand.u32 2147483647, %v510_v49  ;;  %v257_v6 = vmul.f32 %v508_v42, %v256_v57 }
  0x41   :  { %v247_v8 = vadd.f32 1.0, %v246_v59  ;;  %521 = vlog2.f32 %v234_v60  ;;  %v225_v9 = vadd.f32 1.0, %v514_v19  ;;  %v516_v10 = vpop.eup %515  ;;  %v238_v12 = vadd.f32 1.0, %v237_v7  ;;  %v98_v59 = vld [vmem:[#allocation6 + $0x28] sm:$0xff] }
  0x42   :  { %406 = vmatpush.msra.mxu0 %v389_v62  ;;  %v240_v11 = vand.u32 2147483647, %v512_v4  ;;  %v228_v13 = vmul.f32 -0.5, %v514_v19  ;;  %523 = vpow2.f32 %v161_v61  ;;  %v231_v17 = vand.u32 2147483647, %v514_v19  ;;  %v353_v61 = vld [vmem:[#allocation9 + $0x20] sm:$0xff] }
  0x43   :  { %525 = vlog2.f32 %v225_v9  ;;  %v216_v18 = vadd.f32 1.0, %v516_v10  ;;  %v219_v20 = vmul.f32 -0.5, %v516_v10  ;;  %v248_v14 = vmul.f32 %v510_v49, %v247_v8 }
  0x44   :  { %v518_v15 = vpop.eup %517  ;;  %v229_v23 = vadd.f32 1.0, %v228_v13  ;;  %527 = vpow2.f32 %v159_v63  ;;  %v222_v26 = vand.u32 2147483647, %v516_v10  ;;  %vm888_vm5 = vcmp.lt.f32.partialorder %v249_v3, 0.0004427343  ;;  %v97_v3 = vld [vmem:[#allocation6 + $0x20] sm:$0xff] }
  0x45   :  { %v254_v21 = vmul.f32 0.6931472, %v518_v15  ;;  %529 = vlog2.f32 %v216_v18  ;;  %v220_v28 = vadd.f32 1.0, %v219_v20  ;;  %v239_v33 = vmul.f32 %v512_v4, %v238_v12  ;;  %v96_v13 = vld [vmem:[#allocation6 + $0x18] sm:$0xff] }
  0x46   :  { %v520_v29 = vpop.eup %519  ;;  %531 = vpow2.f32 %v157_v5  ;;  %vm895_vm6 = vcmp.lt.f32.partialorder %v240_v11, 0.0004427343  ;;  %vm899_vm7 = vcmp.lt.f32.partialorder %v231_v17, 0.0004427343  ;;  %v230_v43 = vmul.f32 %v514_v19, %v229_v23 }
  0x47   :  { %v260_v31 = vsel %vm880_vm2, %v257_v6, %v254_v21  ;;  %v522_v39 = vpop.eup %521  ;;  %v245_v36 = vmul.f32 0.6931472, %v520_v29  ;;  %v221_v44 = vmul.f32 %v516_v10, %v220_v28  ;;  %vm905_vm8 = vcmp.lt.f32.partialorder %v222_v26, 0.0004427343  ;;  %v352_v6 = vld [vmem:[#allocation9 + $0x18] sm:$0xff] }
  0x48   :  { %v340_v34 = vsel %vm132_vm0, %v754_v22, %v260_v31  ;;  %v524_v16 = vpop.eup %523  ;;  %v236_v42 = vmul.f32 0.6931472, %v522_v39  ;;  %v354_v22 = vld [vmem:[#allocation9 + $0x28] sm:$0xff]  ;;  %vm126_vm13 = vcmp.gt.f32.partialorder %v867_v0, 20.0  ;;  %vm125_vm15 = vcmp.gt.f32.partialorder %v870_v56, 20.0 }
  0x49   :  { %v372_v40 = vmul.f32 %v356_v24, %v340_v34  ;;  %v526_v45 = vpop.eup %525  ;;  %v251_v46 = vsel %vm888_vm5, %v248_v14, %v245_v36  ;;  %v207_v47 = vadd.f32 1.0, %v524_v16  ;;  %v210_v49 = vmul.f32 -0.5, %v524_v16  ;;  %v95_v34 = vld [vmem:[#allocation6 + $0x10] sm:$0xff] }
  0x4a   :  { %v528_v50 = vpop.eup %527  ;;  %v339_v54 = vsel %vm131_vm1, %v757_v27, %v251_v46  ;;  %v242_v4 = vsel %vm895_vm6, %v239_v33, %v236_v42  ;;  %v227_v55 = vmul.f32 0.6931472, %v526_v45  ;;  %v94_v45 = vld [vmem:[#allocation6 + $0x8] sm:$0xff] }
  0x4b   :  { %v388_v51 = vadd.f32 %v372_v40, %v100_v30  ;;  %v530_v57 = vpop.eup %529  ;;  %v371_v58 = vmul.f32 %v355_v41, %v339_v54  ;;  %v338_v60 = vsel %vm130_vm3, %v816_v48, %v242_v4  ;;  %533 = vlog2.f32 %v207_v47  ;;  %v351_v30 = vld [vmem:[#allocation9 + $0x10] sm:$0xff]  ;;  %v350_v41 = vld [vmem:[#allocation9 + $0x8] sm:$0xff]  ;;  %v93_v47 = vld [vmem:[#allocation6] sm:$0xff] }
  0x4c   :  { %v211_v62 = vadd.f32 1.0, %v210_v49  ;;  %v532_v7 = vpop.eup %531  ;;  %v370_v63 = vmul.f32 %v354_v22, %v338_v60  ;;  %v233_v27 = vsel %vm899_vm7, %v230_v43, %v227_v55  ;;  %v218_v19 = vmul.f32 0.6931472, %v530_v57  ;;  %v349_v22 = vld [vmem:[#allocation9] sm:$0xff]  ;;  %v398_v54 = vld [vmem:[#allocation3] sm:$0xff] }
  0x4d   :  { %407 = vmatpush.msra.mxu0 %v388_v51  ;;  %v387_v1 = vadd.f32 %v371_v58, %v99_v53  ;;  %v337_v5 = vsel %vm129_vm4, %v846_v52, %v233_v27  ;;  %v213_v48 = vand.u32 2147483647, %v524_v16  ;;  %v198_v8 = vadd.f32 1.0, %v528_v50  ;;  %v425_v4 = vld [vmem:[%s955_s5] sm:$0x1] }
  0x4e   :  { %v386_v9 = vadd.f32 %v370_v63, %v98_v59  ;;  %v369_v10 = vmul.f32 %v353_v61, %v337_v5  ;;  %v224_v12 = vsel %vm905_vm8, %v221_v44, %v218_v19  ;;  %v201_v11 = vmul.f32 -0.5, %v528_v50  ;;  %v440_v19 = vld [vmem:[%s956_s6] sm:$0x1] }
  0x4f   :  { %408 = vmatpush.msra.mxu0 %v387_v1  ;;  %v336_v15 = vsel %vm128_vm9, %v851_v25, %v224_v12  ;;  %v212_v17 = vmul.f32 %v524_v16, %v211_v62  ;;  %535 = vlog2.f32 %v198_v8  ;;  %v189_v18 = vadd.f32 1.0, %v532_v7 }
  0x50   :  { %v385_v20 = vadd.f32 %v369_v10, %v97_v3  ;;  %v368_v21 = vmul.f32 %v352_v6, %v336_v15  ;;  %v202_v23 = vadd.f32 1.0, %v201_v11  ;;  %v192_v52 = vmul.f32 -0.5, %v532_v7  ;;  %v424_v3 = vld [vmem:[%s954_s4] sm:$0x1] }
  0x51   :  { %v534_v24 = vpop.eup %533  ;;  %409 = vmatpush.msra.mxu0 %v386_v9  ;;  %vm926_vm10 = vcmp.lt.f32.partialorder %v213_v48, 0.0004427343  ;;  %v204_v28 = vand.u32 2147483647, %v528_v50  ;;  %537 = vlog2.f32 %v189_v18  ;;  %v195_v31 = vand.u32 2147483647, %v532_v7 }
  0x52   :  { %v384_v26 = vadd.f32 %v368_v21, %v96_v13  ;;  %v209_v29 = vmul.f32 0.6931472, %v534_v24  ;;  %v193_v25 = vadd.f32 1.0, %v192_v52  ;;  %v203_v33 = vmul.f32 %v528_v50, %v202_v23 }
  0x53   :  { %410 = vmatpush.msra.mxu0 %v385_v20  ;;  %vm205_vm12 = vcmp.lt.f32.partialorder %v204_v28, 0.0004427343  ;;  %vm196_vm14 = vcmp.lt.f32.partialorder %v195_v31, 0.0004427343  ;;  %v427_v55 = vmin.f32 %v425_v4, 20.0  ;;  %vm426_vm1 = vcmp.gt.f32.partialorder %v425_v4, 20.0 }
  0x54   :  { %v215_v32 = vsel %vm926_vm10, %v212_v17, %v209_v29  ;;  %v194_v16 = vmul.f32 %v532_v7, %v193_v25 }
  0x55   :  { %v536_v39 = vpop.eup %535  ;;  %411 = vmatpush.msra.mxu0 %v384_v26  ;;  %v335_v36 = vsel %vm127_vm11, %v861_v35, %v215_v32 }
  0x56   :  { %v367_v37 = vmul.f32 %v351_v30, %v335_v36  ;;  %v200_v38 = vmul.f32 0.6931472, %v536_v39 }
  0x57   :  { %v538_v40 = vpop.eup %537 }
  0x58   :  { %v383_v42 = vadd.f32 %v367_v37, %v95_v34  ;;  %v206_v43 = vsel %vm205_vm12, %v203_v33, %v200_v38  ;;  %v191_v44 = vmul.f32 0.6931472, %v538_v40 }
  0x59   :  { %v334_v46 = vsel %vm126_vm13, %v867_v0, %v206_v43  ;;  %v428_v0 = vmul.f32 1.442695, %v427_v55 }
  0x5a   :  { %412 = vmatpush.msra.mxu0 %v383_v42  ;;  %v366_v35 = vmul.f32 %v350_v41, %v334_v46  ;;  %v197_v2 = vsel %vm196_vm14, %v194_v16, %v191_v44 }
  0x5b   :  { %v333_v49 = vsel %vm125_vm15, %v870_v56, %v197_v2  ;;  %539 = vpow2.f32 %v428_v0 }
  0x5c   :  { %v382_v50 = vadd.f32 %v366_v35, %v94_v45  ;;  %v365_v51 = vmul.f32 %v349_v22, %v333_v49 }
  0x5e   :  { %413 = vmatpush.msra.mxu0 %v382_v50  ;;  %v381_v53 = vadd.f32 %v365_v51, %v93_v47 }
  0x60   :  { %414 = vmatpush.msra.mxu0 %v381_v53 }
  0x61   :  { %415 = vmatmul.f32.vlgmr.msra.gmra.mxu0 %v398_v54  ;;  %v540_v57 = vpop.eup %539 }
  0x62   :  { %v430_v58 = vadd.f32 1.0, %v540_v57  ;;  %v433_v59 = vmul.f32 -0.5, %v540_v57  ;;  %v436_v61 = vand.u32 2147483647, %v540_v57 }
  0x64   :  { %541 = vlog2.f32 %v430_v58  ;;  %v434_v60 = vadd.f32 1.0, %v433_v59  ;;  %vm437_vm0 = vcmp.lt.f32.partialorder %v436_v61, 0.0004427343 }
  0x66   :  { %v435_v7 = vmul.f32 %v540_v57, %v434_v60 }
  0x6a   :  { %v542_v56 = vpop.eup %541 }
  0x6b   :  { %v432_v62 = vmul.f32 0.6931472, %v542_v56 }
  0x6d   :  { %v438_v63 = vsel %vm437_vm0, %v435_v7, %v432_v62 }
  0x6e   :  { %v439_v27 = vsel %vm426_vm1, %v425_v4, %v438_v63 }
  0x6f   :  { %v441_v1 = vmul.f32 %v440_v19, %v439_v27 }
  0x71   :  { %v442_v5 = vadd.f32 %v441_v1, %v424_v3 }
  0x73   :  { %v445_v6 = vperm.slane %v442_v5, 0 }
  0xde   :  { %v416_v48 = vpop.f32.mrf.mxu0 }
  0xdf   :  { %v447_v8 = vadd.f32 %v445_v6, %v416_v48 }
  0xe1   :  { %448 = vst [vmem:[#allocation11] sm:$0xff] %v447_v8 }
  0xe2   :  { %459 = dma.vmem_to_hbm [thread:$0]  %s455_s25, 128, %s457_s28, [#allocation5]  }
  0xe3   :  { %669 = dma.done.wait [#allocation5], 128  }
  0xe4   :  { %670 = vsyncadd [#allocation5], 4294967168 }
  0xe5   :  { %464 = vsyncpa [#allocation4], 1 }
  0xe6   :  { %465 = vsyncpa [#allocation7], 1 }
  0xe7   :  { %466 = vsyncpa [#allocation10], 1 }
  0xe8   :  { %467 = vsyncpa [#allocation5], 1 }

</bundles_post_ra>
